<compile_context>
chip_gen: v5e
topology: v5e:2x2
jax: 0.10.0
libtpu: 0.0.40
codegen_flags: <defaults>
</compile_context>

<pallas_src>
import jax
import jax.numpy as jnp
from jax.experimental import pallas as pl
from jax.experimental.pallas import tpu as pltpu

IN_CH = 3
OUT_CH = 3
K = 2          # kernel_size
S = 2          # stride
ROW_CHUNK = 32  # input rows per inner step (bounds the vreg working set)


def _convt_kernel(b_ref, x_ref, r_ref, wv_ref, o_ref):
    # b_ref  : SMEM (OUT_CH,)                    f32 bias scalars
    # x_ref  : VMEM (1, IN_CH, TH, W)            tile of input rows
    # r_ref  : VMEM (W, 4W)                      static 0/1 lane-expansion matrix
    # wv_ref : VMEM (IN_CH*OUT_CH, 1, 4W)        per-output-lane tap weights
    # o_ref  : VMEM (1, OUT_CH, TH, 4W)          two NCHW output rows per input row
    th = x_ref.shape[2]

    # Hoist tap-weight vectors and biases out of the row-chunk loop (re-used by
    # every chunk; avoids re-issuing the scalar loads + broadcasts per chunk).
    wv = [[wv_ref[ic * OUT_CH + oc] for oc in range(OUT_CH)]   # each (1, 4W)
          for ic in range(IN_CH)]
    bias = [b_ref[oc] for oc in range(OUT_CH)]

    # Static row-chunk loop; every chunk start is a multiple of ROW_CHUNK (8-aligned).
    for r0 in range(0, th, ROW_CHUNK):
        rc = min(ROW_CHUNK, th - r0)
        r_mat = r_ref[...]                                     # (W, 4W)
        # Exact lane expansion on the MXU:
        #   xe[ic][r, j] = x[ic][r, (j % 2W) // 2]
        xe = [
            jnp.dot(x_ref[0, ic, r0:r0 + rc, :], r_mat,
                    precision=jax.lax.Precision.HIGHEST,
                    preferred_element_type=jnp.float32)
            for ic in range(IN_CH)
        ]
        # Remaining work is 9 broadcast FMAs per chunk on the VPU (MXU stays free).
        for oc in range(OUT_CH):
            acc = xe[0] * wv[0][oc]
            acc = acc + xe[1] * wv[1][oc]
            acc = acc + xe[2] * wv[2][oc]
            o_ref[0, oc, r0:r0 + rc, :] = acc + bias[oc]


def _pick_tile_h(n, h, w):
    """Input-row tile size: multiple of 8 (or full extent), big enough to hide the
    ~0.35us per-step overhead, small enough to keep >=4 grid steps for v7x's 2 TCs."""
    ow4 = 4 * w
    bytes_per_row = 4 * (IN_CH * w + OUT_CH * ow4)     # input + output bytes per row
    th = (6 * 1024 * 1024) // max(bytes_per_row, 1)    # ~6 MiB (in+out) per block
    th = max(8, min(th, 1024))
    if th >= h:
        th = h                                         # full extent: any value legal
    else:
        th = (th // 8) * 8                             # (8,128) sublane alignment
    if h >= 16:
        # Guarantee >= 4 grid steps when possible (v7x megacore + pipeline overlap).
        while n * ((h + th - 1) // th) < 4 and th > 8:
            th = max(8, ((th // 2 + 7) // 8) * 8)
    return th


def conv_transpose2d_pallas(x_nchw, weight, bias):
    """ConvTranspose2d(3, 3, kernel_size=2, stride=2) forward.

    x_nchw : [N, 3, H, W]     float32
    weight : [3, 3, 2, 2]     float32 (PyTorch ConvTranspose2d layout [Cin,Cout,Kh,Kw])
    bias   : [3]              float32
    returns: [N, 3, 2H, 2W]   float32
    """
    N, Cin, H, W = x_nchw.shape
    assert Cin == IN_CH
    assert weight.shape == (IN_CH, OUT_CH, K, K)
    OW = S * W          # output width
    OW4 = 2 * OW        # two output rows laid side-by-side in lanes

    dtype = jnp.float32
    x = x_nchw.astype(dtype)

    # ---- tiny constant operands (built once per call with plain JAX) --------
    j = jnp.arange(OW4)
    kh_of_j = j // OW               # which of the two output rows this lane is
    kw_of_j = j % 2                 # kernel tap along W (OW is even)
    src_of_j = (j % OW) // 2        # input column feeding lane j
    # R[iw, j] = 1 iff input column iw feeds output lane j  -> exact lane gather.
    r_mat = (jnp.arange(W)[:, None] == src_of_j[None, :]).astype(dtype)        # (W, 4W)
    # Per-output-lane tap weight: wvec[ic*OUT_CH+oc, 0, j] = w[ic, oc, kh(j), kw(j)]
    wvec = weight.astype(dtype)[:, :, kh_of_j, kw_of_j]                         # (3,3,4W)
    wvec = wvec.reshape(IN_CH * OUT_CH, 1, OW4)
    b_vec = bias.astype(dtype).reshape(OUT_CH)

    th = _pick_tile_h(N, H, W)
    grid = (N, pl.cdiv(H, th))

    # VMEM budget from the actual (double-buffered) blocks.
    in_block = IN_CH * th * W * 4
    out_block = OUT_CH * th * OW4 * 4
    const_blocks = (W * OW4 + IN_CH * OUT_CH * OW4) * 4
    vmem_limit = int(min(48 * 1024 * 1024,
                         max(8 * 1024 * 1024,
                             2 * (in_block + out_block + const_blocks) + (2 << 20))))

    out = pl.pallas_call(
        _convt_kernel,
        out_shape=jax.ShapeDtypeStruct((N, OUT_CH, H, OW4), dtype),
        grid_spec=pltpu.PrefetchScalarGridSpec(
            num_scalar_prefetch=0,
            grid=grid,
            in_specs=[
                pl.BlockSpec(memory_space=pltpu.MemorySpace.SMEM),               # bias
                pl.BlockSpec((1, IN_CH, th, W), lambda n, h: (n, 0, h, 0)),       # x rows
                pl.BlockSpec((W, OW4), lambda n, h: (0, 0)),                      # R (const)
                pl.BlockSpec((IN_CH * OUT_CH, 1, OW4), lambda n, h: (0, 0, 0)),   # taps (const)
            ],
            out_specs=pl.BlockSpec((1, OUT_CH, th, OW4), lambda n, h: (n, 0, h, 0)),
        ),
        compiler_params=pltpu.CompilerParams(
            # both grid axes are embarrassingly parallel -> v7x can use both TCs
            dimension_semantics=("parallel", "parallel"),
            vmem_limit_bytes=vmem_limit,
        ),
        cost_estimate=pl.CostEstimate(
            flops=2 * N * H * W * OW4 * IN_CH            # expansion matmuls (MXU)
            + 2 * N * H * OW4 * IN_CH * OUT_CH,          # tap FMAs (VPU)
            transcendentals=0,
            bytes_accessed=4 * (x.size + N * OUT_CH * H * OW4
                                + W * OW4 + IN_CH * OUT_CH * OW4 + OUT_CH),
        ),
    )(b_vec, x, r_mat, wvec)

    # [N, Cout, H, 4W] is exactly NCHW [N, Cout, 2H, 2W] in row-major memory order:
    # a pure reshape, no transpose, no extra HBM pass.
    return out.reshape(N, OUT_CH, S * H, S * W)


if __name__ == "__main__":
    # Only affects the XLA reference einsum below; the kernel pins HIGHEST itself.
    jax.config.update("jax_default_matmul_precision", "highest")

    key = jax.random.PRNGKey(0)
    k_x, k_w, k_b = jax.random.split(key, 3)

    # Small deterministic example consistent with the module (Cin must be 3).
    N, H, W = 2, 32, 32
    x = jax.random.normal(k_x, (N, IN_CH, H, W), dtype=jnp.float32)
    weight = jax.random.normal(k_w, (IN_CH, OUT_CH, K, K), dtype=jnp.float32) * 0.1
    bias = jax.random.normal(k_b, (OUT_CH,), dtype=jnp.float32) * 0.1

    out = conv_transpose2d_pallas(x, weight, bias)
    out = jax.block_until_ready(out)

    # Reference implementing PyTorch ConvTranspose2d(3,3,2,2) semantics directly:
    #   ref[n, oc, 2*ih+kh, 2*iw+kw] = sum_ic x[n, ic, ih, iw] * w[ic, oc, kh, kw] + b[oc]
    ref = jnp.einsum("nchw,cokl->nohkwl", x, weight).reshape(N, OUT_CH, S * H, S * W)
    ref = ref + bias.reshape(1, OUT_CH, 1, 1)
    ref = jax.block_until_ready(ref)

    assert out.shape == (N, OUT_CH, S * H, S * W), out.shape
    max_err = float(jnp.max(jnp.abs(out - ref)))
    assert jnp.allclose(out, ref, atol=1e-5, rtol=1e-5), max_err
    print("KERNEL_OK")
</pallas_src>

<mosaic_0001>
module attributes {stable_mosaic.version = 11 : i64} {
  func.func @_convt_kernel(%arg0: i32, %arg1: i32, %arg2: memref<3xf32, #tpu.memory_space<smem>>, %arg3: memref<1x3x16x32xf32, #tpu.memory_space<vmem>>, %arg4: memref<32x128xf32, #tpu.memory_space<vmem>>, %arg5: memref<9x1x128xf32, #tpu.memory_space<vmem>>, %arg6: memref<1x3x16x128xf32, #tpu.memory_space<vmem>>) attributes {dimension_semantics = [#tpu.dimension_semantics<parallel>, #tpu.dimension_semantics<parallel>], iteration_bounds = array<i64: 2, 2>, scalar_prefetch = 0 : i64, scratch_operands = 0 : i64, tpu.core_type = #tpu.core_type<tc>, window_params = [{transform_indices = @transform_0, window_bounds = array<i64: 3>}, {transform_indices = @transform_1, window_bounds = array<i64: 1, 3, 16, 32>}, {pipeline_mode = #tpu.pipeline_mode<synchronous>, transform_indices = @transform_2, window_bounds = array<i64: 32, 128>}, {pipeline_mode = #tpu.pipeline_mode<synchronous>, transform_indices = @transform_3, window_bounds = array<i64: 9, 1, 128>}, {transform_indices = @transform_4, window_bounds = array<i64: 1, 3, 16, 128>}]} {
    %c0 = arith.constant 0 : index
    %c0_0 = arith.constant 0 : index
    %c0_1 = arith.constant 0 : index
    %0 = vector.load %arg5[%c0, %c0_0, %c0_1] : memref<9x1x128xf32, #tpu.memory_space<vmem>>, vector<1x1x128xf32>
    %1 = vector.shape_cast %0 : vector<1x1x128xf32> to vector<1x128xf32>
    %c1 = arith.constant 1 : index
    %c0_2 = arith.constant 0 : index
    %c0_3 = arith.constant 0 : index
    %2 = vector.load %arg5[%c1, %c0_2, %c0_3] : memref<9x1x128xf32, #tpu.memory_space<vmem>>, vector<1x1x128xf32>
    %3 = vector.shape_cast %2 : vector<1x1x128xf32> to vector<1x128xf32>
    %c2 = arith.constant 2 : index
    %c0_4 = arith.constant 0 : index
    %c0_5 = arith.constant 0 : index
    %4 = vector.load %arg5[%c2, %c0_4, %c0_5] : memref<9x1x128xf32, #tpu.memory_space<vmem>>, vector<1x1x128xf32>
    %5 = vector.shape_cast %4 : vector<1x1x128xf32> to vector<1x128xf32>
    %c3 = arith.constant 3 : index
    %c0_6 = arith.constant 0 : index
    %c0_7 = arith.constant 0 : index
    %6 = vector.load %arg5[%c3, %c0_6, %c0_7] : memref<9x1x128xf32, #tpu.memory_space<vmem>>, vector<1x1x128xf32>
    %7 = vector.shape_cast %6 : vector<1x1x128xf32> to vector<1x128xf32>
    %c4 = arith.constant 4 : index
    %c0_8 = arith.constant 0 : index
    %c0_9 = arith.constant 0 : index
    %8 = vector.load %arg5[%c4, %c0_8, %c0_9] : memref<9x1x128xf32, #tpu.memory_space<vmem>>, vector<1x1x128xf32>
    %9 = vector.shape_cast %8 : vector<1x1x128xf32> to vector<1x128xf32>
    %c5 = arith.constant 5 : index
    %c0_10 = arith.constant 0 : index
    %c0_11 = arith.constant 0 : index
    %10 = vector.load %arg5[%c5, %c0_10, %c0_11] : memref<9x1x128xf32, #tpu.memory_space<vmem>>, vector<1x1x128xf32>
    %11 = vector.shape_cast %10 : vector<1x1x128xf32> to vector<1x128xf32>
    %c6 = arith.constant 6 : index
    %c0_12 = arith.constant 0 : index
    %c0_13 = arith.constant 0 : index
    %12 = vector.load %arg5[%c6, %c0_12, %c0_13] : memref<9x1x128xf32, #tpu.memory_space<vmem>>, vector<1x1x128xf32>
    %13 = vector.shape_cast %12 : vector<1x1x128xf32> to vector<1x128xf32>
    %c7 = arith.constant 7 : index
    %c0_14 = arith.constant 0 : index
    %c0_15 = arith.constant 0 : index
    %14 = vector.load %arg5[%c7, %c0_14, %c0_15] : memref<9x1x128xf32, #tpu.memory_space<vmem>>, vector<1x1x128xf32>
    %15 = vector.shape_cast %14 : vector<1x1x128xf32> to vector<1x128xf32>
    %c8 = arith.constant 8 : index
    %c0_16 = arith.constant 0 : index
    %c0_17 = arith.constant 0 : index
    %16 = vector.load %arg5[%c8, %c0_16, %c0_17] : memref<9x1x128xf32, #tpu.memory_space<vmem>>, vector<1x1x128xf32>
    %17 = vector.shape_cast %16 : vector<1x1x128xf32> to vector<1x128xf32>
    %c0_18 = arith.constant 0 : index
    %18 = memref.load %arg2[%c0_18] : memref<3xf32, #tpu.memory_space<smem>>
    %c1_19 = arith.constant 1 : index
    %19 = memref.load %arg2[%c1_19] : memref<3xf32, #tpu.memory_space<smem>>
    %c2_20 = arith.constant 2 : index
    %20 = memref.load %arg2[%c2_20] : memref<3xf32, #tpu.memory_space<smem>>
    %c0_21 = arith.constant 0 : index
    %c0_22 = arith.constant 0 : index
    %21 = vector.load %arg4[%c0_21, %c0_22] : memref<32x128xf32, #tpu.memory_space<vmem>>, vector<32x128xf32>
    %c0_23 = arith.constant 0 : index
    %c0_24 = arith.constant 0 : index
    %c0_25 = arith.constant 0 : index
    %c0_26 = arith.constant 0 : index
    %22 = vector.load %arg3[%c0_23, %c0_24, %c0_25, %c0_26] : memref<1x3x16x32xf32, #tpu.memory_space<vmem>>, vector<1x1x16x32xf32>
    %23 = vector.shape_cast %22 : vector<1x1x16x32xf32> to vector<16x32xf32>
    %cst = arith.constant dense<0.000000e+00> : vector<16x128xf32>
    %24 = tpu.matmul %23, %21, %cst {dimension_numbers = #tpu.dot_dimension_numbers<[1], [0], [0], [1], [0, 0, 1, 1], [], []>, precision = #tpu.contract_precision<fp32>} : vector<16x32xf32>, vector<32x128xf32>, vector<16x128xf32> -> vector<16x128xf32>
    %c0_27 = arith.constant 0 : index
    %c1_28 = arith.constant 1 : index
    %c0_29 = arith.constant 0 : index
    %c0_30 = arith.constant 0 : index
    %25 = vector.load %arg3[%c0_27, %c1_28, %c0_29, %c0_30] : memref<1x3x16x32xf32, #tpu.memory_space<vmem>>, vector<1x1x16x32xf32>
    %26 = vector.shape_cast %25 : vector<1x1x16x32xf32> to vector<16x32xf32>
    %cst_31 = arith.constant dense<0.000000e+00> : vector<16x128xf32>
    %27 = tpu.matmul %26, %21, %cst_31 {dimension_numbers = #tpu.dot_dimension_numbers<[1], [0], [0], [1], [0, 0, 1, 1], [], []>, precision = #tpu.contract_precision<fp32>} : vector<16x32xf32>, vector<32x128xf32>, vector<16x128xf32> -> vector<16x128xf32>
    %c0_32 = arith.constant 0 : index
    %c2_33 = arith.constant 2 : index
    %c0_34 = arith.constant 0 : index
    %c0_35 = arith.constant 0 : index
    %28 = vector.load %arg3[%c0_32, %c2_33, %c0_34, %c0_35] : memref<1x3x16x32xf32, #tpu.memory_space<vmem>>, vector<1x1x16x32xf32>
    %29 = vector.shape_cast %28 : vector<1x1x16x32xf32> to vector<16x32xf32>
    %cst_36 = arith.constant dense<0.000000e+00> : vector<16x128xf32>
    %30 = tpu.matmul %29, %21, %cst_36 {dimension_numbers = #tpu.dot_dimension_numbers<[1], [0], [0], [1], [0, 0, 1, 1], [], []>, precision = #tpu.contract_precision<fp32>} : vector<16x32xf32>, vector<32x128xf32>, vector<16x128xf32> -> vector<16x128xf32>
    %31 = vector.broadcast %1 : vector<1x128xf32> to vector<16x128xf32>
    %32 = arith.mulf %24, %31 : vector<16x128xf32>
    %33 = vector.broadcast %7 : vector<1x128xf32> to vector<16x128xf32>
    %34 = arith.mulf %27, %33 : vector<16x128xf32>
    %35 = arith.addf %32, %34 : vector<16x128xf32>
    %36 = vector.broadcast %13 : vector<1x128xf32> to vector<16x128xf32>
    %37 = arith.mulf %30, %36 : vector<16x128xf32>
    %38 = arith.addf %35, %37 : vector<16x128xf32>
    %39 = vector.broadcast %18 : f32 to vector<16x128xf32>
    %40 = arith.addf %38, %39 : vector<16x128xf32>
    %c0_37 = arith.constant 0 : index
    %c0_38 = arith.constant 0 : index
    %c0_39 = arith.constant 0 : index
    %c0_40 = arith.constant 0 : index
    %41 = vector.load %arg6[%c0_37, %c0_38, %c0_39, %c0_40] : memref<1x3x16x128xf32, #tpu.memory_space<vmem>>, vector<1x1x16x128xf32>
    %42 = vector.shape_cast %41 : vector<1x1x16x128xf32> to vector<16x128xf32>
    %43 = vector.shape_cast %40 : vector<16x128xf32> to vector<1x1x16x128xf32>
    tpu.vector_store %arg6[%c0_37, %c0_38, %c0_39, %c0_40], %43 {strides = array<i32>} : memref<1x3x16x128xf32, #tpu.memory_space<vmem>>, vector<1x1x16x128xf32>,
    %44 = vector.broadcast %3 : vector<1x128xf32> to vector<16x128xf32>
    %45 = arith.mulf %24, %44 : vector<16x128xf32>
    %46 = vector.broadcast %9 : vector<1x128xf32> to vector<16x128xf32>
    %47 = arith.mulf %27, %46 : vector<16x128xf32>
    %48 = arith.addf %45, %47 : vector<16x128xf32>
    %49 = vector.broadcast %15 : vector<1x128xf32> to vector<16x128xf32>
    %50 = arith.mulf %30, %49 : vector<16x128xf32>
    %51 = arith.addf %48, %50 : vector<16x128xf32>
    %52 = vector.broadcast %19 : f32 to vector<16x128xf32>
    %53 = arith.addf %51, %52 : vector<16x128xf32>
    %c0_41 = arith.constant 0 : index
    %c1_42 = arith.constant 1 : index
    %c0_43 = arith.constant 0 : index
    %c0_44 = arith.constant 0 : index
    %54 = vector.load %arg6[%c0_41, %c1_42, %c0_43, %c0_44] : memref<1x3x16x128xf32, #tpu.memory_space<vmem>>, vector<1x1x16x128xf32>
    %55 = vector.shape_cast %54 : vector<1x1x16x128xf32> to vector<16x128xf32>
    %56 = vector.shape_cast %53 : vector<16x128xf32> to vector<1x1x16x128xf32>
    tpu.vector_store %arg6[%c0_41, %c1_42, %c0_43, %c0_44], %56 {strides = array<i32>} : memref<1x3x16x128xf32, #tpu.memory_space<vmem>>, vector<1x1x16x128xf32>,
    %57 = vector.broadcast %5 : vector<1x128xf32> to vector<16x128xf32>
    %58 = arith.mulf %24, %57 : vector<16x128xf32>
    %59 = vector.broadcast %11 : vector<1x128xf32> to vector<16x128xf32>
    %60 = arith.mulf %27, %59 : vector<16x128xf32>
    %61 = arith.addf %58, %60 : vector<16x128xf32>
    %62 = vector.broadcast %17 : vector<1x128xf32> to vector<16x128xf32>
    %63 = arith.mulf %30, %62 : vector<16x128xf32>
    %64 = arith.addf %61, %63 : vector<16x128xf32>
    %65 = vector.broadcast %20 : f32 to vector<16x128xf32>
    %66 = arith.addf %64, %65 : vector<16x128xf32>
    %c0_45 = arith.constant 0 : index
    %c2_46 = arith.constant 2 : index
    %c0_47 = arith.constant 0 : index
    %c0_48 = arith.constant 0 : index
    %67 = vector.load %arg6[%c0_45, %c2_46, %c0_47, %c0_48] : memref<1x3x16x128xf32, #tpu.memory_space<vmem>>, vector<1x1x16x128xf32>
    %68 = vector.shape_cast %67 : vector<1x1x16x128xf32> to vector<16x128xf32>
    %69 = vector.shape_cast %66 : vector<16x128xf32> to vector<1x1x16x128xf32>
    tpu.vector_store %arg6[%c0_45, %c2_46, %c0_47, %c0_48], %69 {strides = array<i32>} : memref<1x3x16x128xf32, #tpu.memory_space<vmem>>, vector<1x1x16x128xf32>,
    return
  }
  func.func @transform_0(%arg0: i32, %arg1: i32) -> i32 {
    %c0_i32 = arith.constant 0 : i32
    %c0_i32_0 = arith.constant 0 : i32
    return %c0_i32 : i32
  }
  func.func @transform_1(%arg0: i32, %arg1: i32) -> (i32, i32, i32, i32) {
    %c0_i32 = arith.constant 0 : i32
    %c0_i32_0 = arith.constant 0 : i32
    %c0_i32_1 = arith.constant 0 : i32
    return %arg0, %c0_i32, %arg1, %c0_i32_0 : i32, i32, i32, i32
  }
  func.func @transform_2(%arg0: i32, %arg1: i32) -> (i32, i32) {
    %c0_i32 = arith.constant 0 : i32
    %c0_i32_0 = arith.constant 0 : i32
    %c0_i32_1 = arith.constant 0 : i32
    return %c0_i32, %c0_i32_0 : i32, i32
  }
  func.func @transform_3(%arg0: i32, %arg1: i32) -> (i32, i32, i32) {
    %c0_i32 = arith.constant 0 : i32
    %c0_i32_0 = arith.constant 0 : i32
    %c0_i32_1 = arith.constant 0 : i32
    %c0_i32_2 = arith.constant 0 : i32
    return %c0_i32, %c0_i32_0, %c0_i32_1 : i32, i32, i32
  }
  func.func @transform_4(%arg0: i32, %arg1: i32) -> (i32, i32, i32, i32) {
    %c0_i32 = arith.constant 0 : i32
    %c0_i32_0 = arith.constant 0 : i32
    %c0_i32_1 = arith.constant 0 : i32
    return %arg0, %c0_i32, %arg1, %c0_i32_0 : i32, i32, i32, i32
  }
}

</mosaic_0001>

<bundles_post_ra>
// kernel: tpu_custom_call.1
= control target key start
LH: loop header
LB: loop body
LE: loop exit
PB: predicated region body
PF: predicated region fallthrough
CT: control target
= control target key end

     0   :  { %s2023_s0 = inlined_call_operand.hbm [shape: f32[3], index: 0, kind: input, shape index: {}]   ;;  %s2024_s1 = inlined_call_operand.hbm [shape: f32[2,3,32,32], index: 1, kind: input, shape index: {}]   ;;  %s2025_s2 = inlined_call_operand.hbm [shape: f32[32,128], index: 2, kind: input, shape index: {}]   ;;  %s2026_s3 = inlined_call_operand.hbm [shape: f32[9,1,128], index: 3, kind: input, shape index: {}]   ;;  %s2027_s4 = inlined_call_operand.hbm [shape: f32[2,3,32,128], index: 4, kind: output, shape index: {}]  }
   0x1   :  { %2032 = sst [smem:[#allocation25_spill]] %s2023_s0 }
   0x2   :  { %2033 = sst [smem:[#allocation26_spill]] %s2025_s2 }
   0x3   :  { %2034 = sst [smem:[#allocation27_spill]] %s2027_s4 }
   0x4   :  { %9 = vsyncpa [#allocation5], 0 }
   0x5   :  { %10 = vsyncpa [#allocation3], 0 }
   0x6   :  { %12 = vsyncpa [#allocation3 + $0x1], 0 }
   0x7   :  { %13 = vsyncpa [#allocation8], 0 }
   0x8   :  { %14 = vsyncpa [#allocation4], 0 }
   0x9   :  { %16 = vsyncpa [#allocation4 + $0x1], 0  ;;  %s1629_s15 = smov 0   ;;  %s1631_s16 = smov 0  }
   0xa   :  { %s1633_s17 = smov 0   ;;  %s1635_s18 = smov 0  }
   0xb   :  { %s1637_s19 = smov 0   ;;  %s1639_s20 = smov 0  }
   0xc   :  { %s1641_s21 = smov 0   ;;  %s1643_s22 = smov 0  }
   0xd LB: > { %2035 = sst [smem:[#allocation20_spill]] %s1554_s15  ;;  %s1245_s23 = sadd.s32 4294967295, %s1582_s22   ;;  %s1582_s22 = sphi %s1643_s22, %s22_s22   ;;  %s1578_s21 = sphi %s1641_s21, %s2061_s21   ;;  %s1574_s20 = sphi %s1639_s20, %s2060_s20   ;;  %s1570_s19 = sphi %s1637_s19, %s2059_s19   ;;  %s1566_s18 = sphi %s1635_s18, %s2058_s18   ;;  %s1562_s17 = sphi %s1633_s17, %s2057_s17   ;;  %s1558_s16 = sphi %s1631_s16, %s2056_s16   ;;  %s1554_s15 = sphi %s1629_s15, %s2055_s15  }
   0xe   : > { %s1246_s24 = sadd.s32 4294967294, %s1582_s22   ;;  %s31_s25 = sadd.s32 1, %s1574_s20 }
   0xf   : > { %s34_s26 = sadd.s32 1, %s1578_s21  ;;  %p32_p0 = scmp.ge.s32.totalorder %s31_s25, 2 }
  0x10   : > { %s64_s27 = sadd.s32 1, %s1562_s17  ;;  %p71_p1 = scmp.ne.s32.totalorder %s1562_s17, %s1558_s16 }
  0x11   : > { %p72_p2 = scmp.eq.s32.totalorder %s1582_s22, 0  ;;  %s2063_s25 = smov (%p32_p0, %s31_s25), 0 }
  0x12   : > { %2036 = sst [smem:[#allocation21_spill]] %s2063_s25  ;;  %s2065_s26 = smov (!%p32_p0, %s34_s26), %s1578_s21 }
  0x13   : > { %s60_s28 = ssub.s32 %s1574_s20, %s2063_s25  ;;  %p1682_p3 = por %p72_p2, %p71_p1 }
  0x14   : > { %p36_p4 = scmp.ge.s32.totalorder %s2065_s26, 2  ;;  %p77_p5 = scmp.ne.s32.totalorder %s1558_s16, %s1554_s15 }
  0x15   : > { %p1688_p6 = scmp.eq.s32.totalorder %s1245_s23, 0  ;;  %p145_p7 = scmp.eq.s32.totalorder %s1245_s23, 3 }
  0x16   : > { %s2067_s26 = smov (%p36_p4, %s2065_s26), 0  ;;  %p151_p10 = scmp.eq.s32.totalorder %s1246_s24, 3 }
  0x17   : > { %2039 = sst [smem:[#allocation22_spill]] %s2067_s26  ;;  %p1696_p8 = por %p1688_p6, %p77_p5 }
  0x18   : > { %p1700_p9 = por %p145_p7, %p71_p1  ;;  %s59_s7 = ssub.s32 %s1578_s21, %s2067_s26 }
  0x19   : > { %s61_s8 = sor.u32 %s60_s28, %s59_s7  ;;  %p1247_p11 = scmp.ge.s32.totalorder %s1582_s22, 1 }
  0x1a   : > { %p62_p12 = scmp.eq.s32.totalorder %s61_s8, 0  ;;  %p1707_p13 = por %p151_p10, %p77_p5 }
  0x1b   : > { %p158_p0 = scmp.lt.s32.totalorder %s1582_s22, 5  ;;  %s2046_s2 = sld [smem:[#allocation26_spill]] }
  0x1c   : > { %s2042_s9 = scalar_select %p1707_p13, 1, 0 }
  0x1d   : > { %s1713_s10 = scalar_select %p62_p12, %s1562_s17, %s64_s27  }
  0x1e   : > { %2043 = sst [smem:[#allocation23_spill]] %s2042_s9  ;;  %p1715_p2 = pnand %p1247_p11, %p158_p0 }
  0x1f   : > { %2044 = sst [smem:[#allocation24_spill]] %s1713_s10  ;;  %s1584_s23 = smov [#allocation7]  }
  0x20   : > { %p1315_p1 = pneg %p1715_p2  ;;  %s181_s24 = sshll.u32 %s1584_s23, 4  ;;  %s182_s24 = int_to_ptr.vmem [resolvable:$true] %s181_s24 }
  0x21   : > { %s179_s14 = sshll.u32 %s2046_s2, 4  ;;  %s1585_s27 = smov 128   ;;  %s180_s14 = int_to_ptr.hbm [resolvable:$true] %s179_s14 }
  0x22   : > { %p1726_p4 = pnand %p1315_p1, %p1688_p6  ;;  %s1586_s7 = smov 8  }
  0x23   : > { %s2048_s0 = sld [smem:[#allocation25_spill]]  ;;  %s1587_s2 = smov [#allocation2]  }
  0x24   : > { %1321 = dma.hbm_to_vmem [thread:$0]  (!%p1726_p4), %s180_s14, 512, %s182_s24, [#allocation8], %s1585_s27, %s1585_s27, %s1586_s7  }
  0x25   : > { %s193_s25 = sshll.u32 %s2026_s3, 4  ;;  %s1588_s10 = smov [#allocation9]   ;;  %s194_s25 = int_to_ptr.hbm [resolvable:$true] %s193_s25 }
  0x26   : > { %s195_s9 = sshll.u32 %s1588_s10, 4  ;;  %s1589_s15 = smov 16   ;;  %s196_s9 = int_to_ptr.vmem [resolvable:$true] %s195_s9 }
  0x27   : > { %s1590_s4 = smov 1   ;;  %p1251_p5 = scmp.ge.s32.totalorder %s1582_s22, 4 }
  0x28   : > { %1324 = dma.hbm_to_vmem [thread:$0]  (!%p1726_p4), %s194_s25, 144, %s196_s9, [#allocation8], %s1589_s15, %s1589_s15, %s1590_s4  }
  0x29   : > { %s170_s13 = sshll.u32 %s2048_s0, 4  ;;  %205 = sbr.rel (%p1251_p5) target bundleno = 63 (0x3f), region = 28  ;;  %s171_s13 = int_to_ptr.hbm [resolvable:$true] %s170_s13 }
  0x2a   : > { %1318 = dma.hbm_to_smem (!%p1726_p4), %s171_s13, 16, %s1587_s2, [#allocation5]  }
  0x2e   : > { %s209_s2 = sand.u32 1, %s1562_s17   ;;  %s1252_s14 = sshll.u32 %s1574_s20, 1 }
  0x2f   : > { %s1282_s26 = smul.u32 48, %s209_s2  ;;  %s1591_s10 = smov 512  }
  0x30   : > { %s1283_s24 = smul.u32 12, %s1578_s21  ;;  %1293 = sst [smem:[#allocation12]] (%p1682_p3), %s1591_s10 }
  0x31   : > { %s1292_s27 = scalar_select %p1682_p3, [#allocation0], [#allocation15] }
  0x32   : > { %s218_s28 = sadd.s32 %s1283_s24, %s1252_s14  ;;  %s213_s7 = scalar_lea.vmem [#allocation6], %s1282_s26 }
  0x33   : > { %s1253_s4 = sshll.u32 %s218_s28, 3  ;;  %s235_s8 = sshll.u32 %s213_s7, 4  ;;  %s236_s8 = int_to_ptr.vmem [resolvable:$true] %s235_s8 }
  0x34   : > { %s220_s9 = scalar_lea.hbm %s2024_s1, %s1253_s4  ;;  %s1592_s12 = smov 256  }
  0x35   : > { %1294 = sst [smem:[#allocation12 + $0x1]] (%p1682_p3), %s1592_s12  ;;  %s233_s23 = sshll.u32 %s220_s9, 4  ;;  %s234_s23 = int_to_ptr.hbm [resolvable:$true] %s233_s23 }
  0x36   : > { %s225_s13 = sld [smem:[%s1292_s27]]   ;;  %s1593_s0 = smov 2  }
  0x37   : > { %1295 = sst [smem:[#allocation12 + $0x2]] (%p1682_p3), %s1593_s0  ;;  %s1594_s14 = smov 128  }
  0x38   : > { %1296 = sst [smem:[#allocation12 + $0x3]] (%p1682_p3), %s1594_s14  ;;  %s1595_s24 = smov 8  }
  0x39   : > { %1297 = sst [smem:[#allocation12 + $0x4]] (%p1682_p3), %s1594_s14  ;;  %s210_s28 = scalar_lea.sflag [#allocation3], %s209_s2 }
  0x3a   : > { %1298 = sst [smem:[#allocation12 + $0x5]] (%p1682_p3), %s1595_s24  ;;  %s1596_s4 = smov [#allocation11]  }
  0x3c   : > { %s1254_s26 = sshll.u32 %s225_s13, 26 }
  0x3d   : > { %s1255_s10 = sadd.s32 134217728, %s1254_s26 }
  0x3e   : > { %1299 = dma.general (%p1682_p3), %s234_s23, 768, %s236_s8, %s210_s28, %s1596_s4, [#allocation12], %s1255_s10, 0  }
  0x3f PF: > { %260 = sbr.rel (%p1715_p2) target bundleno = 321 (0x141), region = 36 }
  0x44   : > { %1537 = dma.done.wait (%p1688_p6), [#allocation5], 16  }
  0x45   : > { %1539 = vsyncadd (%p1688_p6), [#allocation5], 4294967280  ;;  %s1772_s0 = sand.u32 1, %s1558_s16  }
  0x46   : > { %s1284_s2 = smul.u32 48, %s1772_s0  ;;  %s268_s29 = scalar_lea.sflag [#allocation3], %s1772_s0 }
  0x48   : > { %s1778_s15 = scalar_lea.vmem [#allocation6], %s1284_s2 }
  0x49   : > { %1541 = dma.done.wait (%p1696_p8), %s268_s29, 768  }
  0x4a   : > { %1543 = vsyncadd (%p1696_p8), %s268_s29, 4294966528 }
  0x4b   : > { %1545 = dma.done.wait (%p1688_p6), [#allocation8], 656  }
  0x4c   : > { %1547 = vsyncadd (%p1688_p6), [#allocation8], 4294966640 }
  0x4d   : > { %287 = sfence }
  0x4e   : > { %v333_v0 = vld [vmem:[#allocation7 + $0x18] sm:$0xff]  ;;  %v332_v1 = vld [vmem:[#allocation7 + $0x10] sm:$0xff]  ;;  %v331_v2 = vld [vmem:[#allocation7 + $0x8] sm:$0xff]  ;;  %vm336_vm0 = vcmask 261120   ;;  %s1963_s30 = sld [smem:[#allocation2]]  ;;  %s307_s25 = scalar_lea.vmem [#allocation10], %s1284_s2 }
  0x4f   : > { %v1788_v3 = vand.u32 4294901760, %v333_v0  ;;  %v1790_v4 = vand.u32 4294901760, %v332_v1  ;;  %v1792_v5 = vand.u32 4294901760, %v331_v2  ;;  %v330_v6 = vld [vmem:[#allocation7] sm:$0xff]  ;;  %v335_v7 = vld [vmem:[%s1778_s15 + $0x8] sm:$0xff]  ;;  %v1263_v41 = vld [vmem:[%s1778_s15 + $0x18] sm:$0xff] }
  0x50   : > { %v334_v8 = vld [vmem:[%s1778_s15] sm:$0xff]  ;;  %v1796_v9 = vand.u32 4294901760, %v330_v6  ;;  %v341_v10 = vsel %vm336_vm0, %v335_v7, 0  ;;  %v1262_v36 = vld [vmem:[%s1778_s15 + $0x10] sm:$0xff]  ;;  %v566_v43 = vsel %vm336_vm0, %v1263_v41, 0  ;;  %v1265_v54 = vld [vmem:[%s1778_s15 + $0x28] sm:$0xff] }
  0x51   : > { %v338_v11 = vsel %vm336_vm0, %v334_v8, 0  ;;  %1274 = vmatpush.msra.mxu2 %v1788_v3  ;;  %v1802_v12 = vsub.f32 %v333_v0, %v1788_v3  ;;  %v1804_v13 = vand.u32 4294901760, %v341_v10  ;;  %v1807_v14 = vsub.f32 %v332_v1, %v1790_v4  ;;  %356 = vmatpush.msra.mxu0 %v1788_v3  ;;  %v1264_v48 = vld [vmem:[%s1778_s15 + $0x20] sm:$0xff]  ;;  %s1965_s5 = sld [smem:[#allocation2 + $0x1]]  ;;  %s1084_s9 = scalar_lea.sflag [#allocation4], %s1772_s0 }
  0x52   : > { %v1810_v15 = vsub.f32 %v331_v2, %v1792_v5  ;;  %v1814_v16 = vsub.f32 %v330_v6, %v1796_v9  ;;  %v1816_v17 = vand.u32 4294901760, %v338_v11  ;;  %v563_v39 = vsel %vm336_vm0, %v1262_v36, 0  ;;  %s1967_s11 = sld [smem:[#allocation2 + $0x2]] }
  0x53   : > { %1275 = vmatpush.msra.mxu2 %v1790_v4  ;;  %v1820_v18 = vand.u32 4294901760, %v1802_v12  ;;  %v1823_v19 = vsub.f32 %v341_v10, %v1804_v13  ;;  %v1826_v20 = vand.u32 4294901760, %v1807_v14  ;;  %358 = vmatpush.msra.mxu0 %v1790_v4  ;;  %v1876_v40 = vand.u32 4294901760, %v563_v39 }
  0x54   : > { %v1829_v21 = vand.u32 4294901760, %v1810_v15  ;;  %v1833_v22 = vand.u32 4294901760, %v1814_v16  ;;  %v364_v23 = vsub.f32 %v338_v11, %v1816_v17  ;;  %v1896_v45 = vand.u32 4294901760, %v566_v43 }
  0x55   : > { %1276 = vmatpush.msra.mxu2 %v1792_v5  ;;  %v395_v24 = vsub.f32 %v1802_v12, %v1820_v18  ;;  %v373_v25 = vand.u32 4294901760, %v1823_v19  ;;  %v401_v26 = vsub.f32 %v1807_v14, %v1826_v20  ;;  %360 = vmatpush.msra.mxu0 %v1792_v5  ;;  %v589_v42 = vsub.f32 %v563_v39, %v1876_v40 }
  0x56   : > { %v407_v27 = vsub.f32 %v1810_v15, %v1829_v21  ;;  %v365_v28 = vand.u32 4294901760, %v364_v23  ;;  %v413_v32 = vsub.f32 %v1814_v16, %v1833_v22  ;;  %v597_v47 = vsub.f32 %v566_v43, %v1896_v45 }
  0x57   : > { %1277 = vmatpush.msra.mxu2 %v1796_v9  ;;  %v1846_v29 = vand.u32 4294901760, %v395_v24  ;;  %v374_v30 = vsub.f32 %v1823_v19, %v373_v25  ;;  %v1851_v31 = vand.u32 4294901760, %v401_v26  ;;  %362 = vmatpush.msra.mxu0 %v1796_v9  ;;  %v590_v44 = vand.u32 4294901760, %v589_v42 }
  0x58   : > { %v366_v33 = vsub.f32 %v364_v23, %v365_v28  ;;  %v1859_v35 = vand.u32 4294901760, %v407_v27  ;;  %v1866_v38 = vand.u32 4294901760, %v413_v32  ;;  %v598_v50 = vand.u32 4294901760, %v597_v47 }
  0x59   : > { %439 = vmatpush.msrb.mxu2 %v1802_v12  ;;  %508 = vmatpush.msrb.mxu0 %v1820_v18  ;;  %v375_v34 = vand.u32 4294901760, %v374_v30  ;;  %v591_v46 = vsub.f32 %v589_v42, %v590_v44  ;;  %v788_v51 = vsel %vm336_vm0, %v1264_v48, 0  ;;  %v791_v57 = vsel %vm336_vm0, %v1265_v54, 0 }
  0x5a   : > { %1278 = vmatpush.msra.mxu3 %v1846_v29  ;;  %397 = vmatpush.msra.mxu1 %v1846_v29  ;;  %v367_v37 = vand.u32 4294901760, %v366_v33  ;;  %v599_v52 = vsub.f32 %v597_v47, %v598_v50  ;;  %v813_v53 = vand.u32 4294901760, %v788_v51  ;;  %v821_v59 = vand.u32 4294901760, %v791_v57 }
  0x5b   : > { %442 = vmatpush.msrb.mxu2 %v1807_v14  ;;  %512 = vmatpush.msrb.mxu0 %v1826_v20  ;;  %v592_v49 = vand.u32 4294901760, %v591_v46  ;;  %v1424_v46 = vld [vmem:[#allocation9 + $0x4] ss:$0 sm:$0xff] }
  0x5c   : > { %376 = vmatmul.f32.vlgmr.msra.gmra.mxu2 %v375_v34  ;;  %1279 = vmatpush.msra.mxu3 %v1851_v31  ;;  %v600_v55 = vand.u32 4294901760, %v599_v52  ;;  %v814_v56 = vsub.f32 %v788_v51, %v813_v53  ;;  %v822_v61 = vsub.f32 %v791_v57, %v821_v59  ;;  %v1421_v52 = vld [vmem:[#allocation9 + $0x1] ss:$0 sm:$0xff] }
  0x5d   : > { %445 = vmatpush.msrb.mxu2 %v1810_v15  ;;  %403 = vmatpush.msra.mxu1 %v1851_v31 }
  0x5e   : > { %1280 = vmatpush.msra.mxu3 %v1859_v35  ;;  %368 = vmatmul.f32.vlgmr.msra.gmra.mxu0 %v367_v37  ;;  %v815_v58 = vand.u32 4294901760, %v814_v56  ;;  %v823_v63 = vand.u32 4294901760, %v822_v61 }
  0x5f   : > { %448 = vmatpush.msrb.mxu2 %v1814_v16  ;;  %409 = vmatpush.msra.mxu1 %v1859_v35 }
  0x60   : > { %1281 = vmatpush.msra.mxu3 %v1866_v38  ;;  %516 = vmatpush.msrb.mxu0 %v1829_v21  ;;  %v816_v60 = vsub.f32 %v814_v56, %v815_v58  ;;  %v824_v0 = vsub.f32 %v822_v61, %v823_v63 }
  0x61   : > { %581 = vmatpush.msra.mxu2 %v1788_v3  ;;  %421 = vmatmul.f32.vlgmr.msra.gmra.mxu3 %v1804_v13 }
  0x62   : > { %415 = vmatpush.msra.mxu1 %v1866_v38  ;;  %473 = vmatpush.msrb.mxu3 %v1788_v3  ;;  %v817_v62 = vand.u32 4294901760, %v816_v60  ;;  %v825_v1 = vand.u32 4294901760, %v824_v0  ;;  %v1426_v0 = vld [vmem:[#allocation9 + $0x6] ss:$0 sm:$0xff] }
  0x63   : > { %417 = vmatmul.f32.vlgmr.msra.gmra.mxu1 %v1816_v17  ;;  %583 = vmatpush.msra.mxu2 %v1790_v4 }
  0x64   : > { %543 = vmatpush.msrb.mxu1 %v1788_v3  ;;  %451 = vmatmul.f32.vlgmr.msrb.gmra.mxu2 %v364_v23 }
  0x65   : > { %475 = vmatpush.msrb.mxu3 %v1790_v4  ;;  %585 = vmatpush.msra.mxu2 %v1792_v5 }
  0x66   : > { %545 = vmatpush.msrb.mxu1 %v1790_v4  ;;  %520 = vmatpush.msrb.mxu0 %v1833_v22 }
  0x67   : > { %477 = vmatpush.msrb.mxu3 %v1792_v5  ;;  %522 = vmatmul.f32.vlgmr.msrb.gmra.mxu0 %v1816_v17 }
  0x68   : > { %547 = vmatpush.msrb.mxu1 %v1792_v5  ;;  %664 = vmatpush.msra.mxu0 %v1802_v12 }
  0x69   : > { %479 = vmatpush.msrb.mxu3 %v1796_v9  ;;  %587 = vmatpush.msra.mxu2 %v1796_v9 }
  0x6a   : > { %483 = vmatmul.f32.vlgmr.msrb.gmra.mxu3 %v365_v28  ;;  %549 = vmatpush.msrb.mxu1 %v1796_v9 }
  0x6b   : > { %622 = vmatpush.msra.mxu3 %v1846_v29  ;;  %551 = vmatmul.f32.vlgmr.msrb.gmra.mxu1 %v1816_v17 }
  0x6c   : > { %456 = vmatmul.f32.gmra.mxu2 %v1823_v19  ;;  %698 = vmatpush.msra.mxu1 %v1788_v3 }
  0x6d   : > { %628 = vmatpush.msra.mxu3 %v1851_v31  ;;  %667 = vmatpush.msra.mxu0 %v1807_v14 }
  0x6e   : > { %733 = vmatpush.msrb.mxu2 %v1820_v18  ;;  %700 = vmatpush.msra.mxu1 %v1790_v4 }
  0x6f   : > { %634 = vmatpush.msra.mxu3 %v1859_v35  ;;  %670 = vmatpush.msra.mxu0 %v1810_v15 }
  0x70   : > { %526 = vmatmul.f32.gmra.mxu0 %v1804_v13  ;;  %702 = vmatpush.msra.mxu1 %v1792_v5 }
  0x71   : > { %640 = vmatpush.msra.mxu3 %v1866_v38  ;;  %737 = vmatpush.msrb.mxu2 %v1826_v20 }
  0x72   : > { %489 = vmatmul.f32.gmra.mxu3 %v373_v25  ;;  %673 = vmatpush.msra.mxu0 %v1814_v16 }
  0x73   : > { %555 = vmatmul.f32.gmra.mxu1 %v1804_v13  ;;  %768 = vmatpush.msrb.mxu3 %v1788_v3 }
  0x74   : > { %593 = vmatmul.f32.vlgmr.msra.gmra.mxu2 %v592_v49  ;;  %704 = vmatpush.msra.mxu1 %v1796_v9 }
  0x75   : > { %770 = vmatpush.msrb.mxu3 %v1790_v4  ;;  %741 = vmatpush.msrb.mxu2 %v1829_v21 }
  0x76   : > { %806 = vmatpush.msrb.mxu0 %v1788_v3  ;;  %847 = vmatpush.msrb.mxu1 %v1846_v29 }
  0x77   : > { %772 = vmatpush.msrb.mxu3 %v1792_v5  ;;  %745 = vmatpush.msrb.mxu2 %v1833_v22 }
  0x78   : > { %676 = vmatmul.f32.vlgmr.msra.gmra.mxu0 %v589_v42  ;;  %853 = vmatpush.msrb.mxu1 %v1851_v31 }
  0x79   : > { %774 = vmatpush.msrb.mxu3 %v1796_v9  ;;  %808 = vmatpush.msrb.mxu0 %v1790_v4 }
  0x7a   : > { %642 = vmatmul.f32.vlgmr.msra.gmra.mxu3 %v1876_v40  ;;  %889 = vmatpush.msra.mxu2 %v1802_v12 }
  0x7b   : > { %708 = vmatmul.f32.vlgmr.msra.gmra.mxu1 %v590_v44  ;;  %810 = vmatpush.msrb.mxu0 %v1792_v5 }
  0x7c   : > { %601 = vmatmul.f32.gmra.mxu2 %v600_v55  ;;  %923 = vmatpush.msra.mxu3 %v1788_v3 }
  0x7d   : > { %859 = vmatpush.msrb.mxu1 %v1859_v35  ;;  %892 = vmatpush.msra.mxu2 %v1807_v14 }
  0x7e   : > { %812 = vmatpush.msrb.mxu0 %v1796_v9  ;;  %925 = vmatpush.msra.mxu3 %v1790_v4 }
  0x7f   : > { %865 = vmatpush.msrb.mxu1 %v1866_v38  ;;  %895 = vmatpush.msra.mxu2 %v1810_v15 }
  0x80   : > { %681 = vmatmul.f32.gmra.mxu0 %v597_v47  ;;  %927 = vmatpush.msra.mxu3 %v1792_v5  ;;  %v1425_v47 = vld [vmem:[#allocation9 + $0x5] ss:$0 sm:$0xff] }
  0x81   : > { %958 = vmatpush.msra.mxu0 %v1820_v18  ;;  %898 = vmatpush.msra.mxu2 %v1814_v16 }
  0x82   : > { %646 = vmatmul.f32.gmra.mxu3 %v1896_v45  ;;  %993 = vmatpush.msra.mxu1 %v1788_v3 }
  0x83   : > { %714 = vmatmul.f32.gmra.mxu1 %v598_v50  ;;  %929 = vmatpush.msra.mxu3 %v1796_v9  ;;  %v1420_v50 = vld [vmem:[#allocation9] ss:$0 sm:$0xff] }
  0x84   : > { %747 = vmatmul.f32.vlgmr.msrb.gmra.mxu2 %v1876_v40  ;;  %962 = vmatpush.msra.mxu0 %v1826_v20 }
  0x85   : > { %995 = vmatpush.msra.mxu1 %v1790_v4 }
  0x86   : > { %966 = vmatpush.msra.mxu0 %v1829_v21 }
  0x87   : > { %997 = vmatpush.msra.mxu1 %v1792_v5 }
  0x88   : > { %818 = vmatmul.f32.vlgmr.msrb.gmra.mxu0 %v817_v62 }
  0x89   : > { %970 = vmatpush.msra.mxu0 %v1833_v22  ;;  %999 = vmatpush.msra.mxu1 %v1796_v9 }
  0x8a   : > { %776 = vmatmul.f32.vlgmr.msrb.gmra.mxu3 %v1876_v40 }
  0x8b   : > { %867 = vmatmul.f32.vlgmr.msrb.gmra.mxu1 %v813_v53 }
  0x8c   : > { %751 = vmatmul.f32.gmra.mxu2 %v1896_v45 }
  0x90   : > { %826 = vmatmul.f32.gmra.mxu0 %v825_v1  ;;  %v1427_v1 = vld [vmem:[#allocation9 + $0x7] ss:$0 sm:$0xff] }
  0x92   : > { %780 = vmatmul.f32.gmra.mxu3 %v1896_v45  ;;  %v1423_v45 = vld [vmem:[#allocation9 + $0x3] ss:$0 sm:$0xff] }
  0x93   : > { %871 = vmatmul.f32.gmra.mxu1 %v821_v59 }
  0x94   : > { %901 = vmatmul.f32.vlgmr.msra.gmra.mxu2 %v814_v56 }
  0x98   : > { %972 = vmatmul.f32.vlgmr.msra.gmra.mxu0 %v813_v53 }
  0x9a   : > { %933 = vmatmul.f32.vlgmr.msra.gmra.mxu3 %v815_v58 }
  0x9b   : > { %1001 = vmatmul.f32.vlgmr.msra.gmra.mxu1 %v813_v53  ;;  %v1422_v53 = vld [vmem:[#allocation9 + $0x2] ss:$0 sm:$0xff] }
  0x9c   : > { %906 = vmatmul.f32.gmra.mxu2 %v822_v61 }
  0xa0   : > { %976 = vmatmul.f32.gmra.mxu0 %v821_v59 }
  0xa2   : > { %939 = vmatmul.f32.gmra.mxu3 %v823_v63 }
  0xa3   : > { %1005 = vmatmul.f32.gmra.mxu1 %v821_v59 }
  0xdb   : > { %v369_v2 = vpop.f32.mrf.mxu0 }
  0xdf   : > { %v377_v3 = vpop.f32.mrf.mxu2 }
  0xe0   : > { %v418_v4 = vpop.f32.mrf.mxu1 }
  0xe1   : > { %v419_v26 = vadd.f32 %v418_v4, %v369_v2  ;;  %v1428_v2 = vld [vmem:[#allocation9 + $0x8] ss:$0 sm:$0xff] }
  0xe4   : > { %v422_v5 = vpop.f32.mrf.mxu3  ;;  %v523_v6 = vpop.f32.mrf.mxu0 }
  0xe5   : > { %v423_v39 = vadd.f32 %v422_v5, %v377_v3 }
  0xe7   : > { %v452_v7 = vpop.f32.mrf.mxu2 }
  0xe8   : > { %v552_v8 = vpop.f32.mrf.mxu1  ;;  %v453_v30 = vadd.f32 %v452_v7, %v419_v26 }
  0xed   : > { %v484_v9 = vpop.f32.mrf.mxu3  ;;  %v527_v10 = vpop.f32.mrf.mxu0 }
  0xee   : > { %v485_v32 = vadd.f32 %v484_v9, %v453_v30 }
  0xef   : > { %v457_v11 = vpop.f32.mrf.mxu2 }
  0xf0   : > { %v1961_v12 = vpop.f32.mrf.mxu1  ;;  %v524_v37 = vadd.f32 %v523_v6, %v485_v32  ;;  %v458_v42 = vadd.f32 %v457_v11, %v423_v39 }
  0xf2   : > { %v553_v49 = vadd.f32 %v552_v8, %v524_v37 }
  0xf4   : > { %v1012_v62 = vmul.f32 %v1420_v50, %v553_v49  ;;  %v1036_v3 = vmul.f32 %v1421_v52, %v553_v49  ;;  %v1061_v4 = vmul.f32 %v1422_v53, %v553_v49 }
  0xf5   : > { %v490_v13 = vpop.f32.mrf.mxu3  ;;  %v677_v14 = vpop.f32.mrf.mxu0 }
  0xf6   : > { %v491_v54 = vadd.f32 %v490_v13, %v458_v42 }
  0xf7   : > { %v594_v15 = vpop.f32.mrf.mxu2 }
  0xf8   : > { %v709_v16 = vpop.f32.mrf.mxu1  ;;  %v528_v5 = vadd.f32 %v527_v10, %v491_v54 }
  0xfd   : > { %v643_v17 = vpop.f32.mrf.mxu3  ;;  %v682_v18 = vpop.f32.mrf.mxu0 }
  0xfe   : > { %v644_v27 = vadd.f32 %v643_v17, %v594_v15 }
  0xff   : > { %v602_v19 = vpop.f32.mrf.mxu2 }
 0x100   : > { %v715_v20 = vpop.f32.mrf.mxu1  ;;  %v678_v31 = vadd.f32 %v677_v14, %v644_v27 }
 0x102   : > { %v710_v35 = vadd.f32 %v709_v16, %v678_v31 }
 0x105   : > { %v647_v21 = vpop.f32.mrf.mxu3  ;;  %v819_v22 = vpop.f32.mrf.mxu0 }
 0x106   : > { %v648_v36 = vadd.f32 %v647_v21, %v602_v19  ;;  %v1028_v21 = vstv %s1963_s30 }
 0x107   : > { %v748_v23 = vpop.f32.mrf.mxu2 }
 0x108   : > { %v868_v24 = vpop.f32.mrf.mxu1  ;;  %v749_v40 = vadd.f32 %v748_v23, %v710_v35  ;;  %v683_v43 = vadd.f32 %v682_v18, %v648_v36  ;;  %v1077_v23 = vstv %s1967_s11 }
 0x109   : > { %v869_v41 = vadd.f32 %v868_v24, %v819_v22  ;;  %v1052_v22 = vstv %s1965_s5 }
 0x10a   : > { %v716_v58 = vadd.f32 %v715_v20, %v683_v43  ;;  %v557_v20 = vadd.f32 %v1961_v12, %v528_v5 }
 0x10c   : > { %v1013_v37 = vmul.f32 %v1420_v50, %v557_v20  ;;  %v1037_v12 = vmul.f32 %v1421_v52, %v557_v20 }
 0x10d   : > { %v777_v25 = vpop.f32.mrf.mxu3  ;;  %v827_v29 = vpop.f32.mrf.mxu0 }
 0x10e   : > { %v778_v44 = vadd.f32 %v777_v25, %v749_v40 }
 0x10f   : > { %v752_v28 = vpop.f32.mrf.mxu2 }
 0x110   : > { %v872_v34 = vpop.f32.mrf.mxu1  ;;  %v1017_v59 = vmul.f32 %v1423_v45, %v778_v44  ;;  %v1041_v60 = vmul.f32 %v1424_v46, %v778_v44  ;;  %v1066_v61 = vmul.f32 %v1425_v47, %v778_v44  ;;  %v753_v6 = vadd.f32 %v752_v28, %v716_v58 }
 0x111   : > { %v873_v8 = vadd.f32 %v872_v34, %v827_v29 }
 0x112   : > { %v1019_v11 = vadd.f32 %v1017_v59, %v1012_v62  ;;  %v1043_v13 = vadd.f32 %v1041_v60, %v1036_v3  ;;  %v1068_v14 = vadd.f32 %v1066_v61, %v1061_v4 }
 0x115   : > { %v781_v33 = vpop.f32.mrf.mxu3  ;;  %v973_v48 = vpop.f32.mrf.mxu0 }
 0x116   : > { %v782_v15 = vadd.f32 %v781_v33, %v753_v6 }
 0x117   : > { %v902_v38 = vpop.f32.mrf.mxu2 }
 0x118   : > { %v903_v51 = vadd.f32 %v902_v38, %v869_v41  ;;  %v1002_v56 = vpop.f32.mrf.mxu1  ;;  %v1018_v29 = vmul.f32 %v1423_v45, %v782_v15  ;;  %v1042_v30 = vmul.f32 %v1424_v46, %v782_v15  ;;  %v1067_v31 = vmul.f32 %v1425_v47, %v782_v15 }
 0x119   : > { %v1062_v38 = vmul.f32 %v1422_v53, %v557_v20 }
 0x11a   : > { %v1020_v40 = vadd.f32 %v1018_v29, %v1013_v37  ;;  %v1044_v41 = vadd.f32 %v1042_v30, %v1037_v12 }
 0x11b   : > { %v1069_v42 = vadd.f32 %v1067_v31, %v1062_v38 }
 0x11d   : > { %v934_v55 = vpop.f32.mrf.mxu3  ;;  %v977_v10 = vpop.f32.mrf.mxu0 }
 0x11e   : > { %v935_v57 = vadd.f32 %v934_v55, %v903_v51 }
 0x11f   : > { %v907_v7 = vpop.f32.mrf.mxu2 }
 0x120   : > { %v974_v63 = vadd.f32 %v973_v48, %v935_v57  ;;  %v908_v16 = vadd.f32 %v907_v7, %v873_v8  ;;  %v1006_v32 = vpop.f32.mrf.mxu1 }
 0x122   : > { %v1003_v9 = vadd.f32 %v1002_v56, %v974_v63 }
 0x124   : > { %v1024_v17 = vmul.f32 %v1426_v0, %v1003_v9  ;;  %v1048_v18 = vmul.f32 %v1427_v1, %v1003_v9  ;;  %v1073_v19 = vmul.f32 %v1428_v2, %v1003_v9 }
 0x125   : > { %v940_v24 = vpop.f32.mrf.mxu3 }
 0x126   : > { %v1026_v25 = vadd.f32 %v1024_v17, %v1019_v11  ;;  %v1050_v26 = vadd.f32 %v1048_v18, %v1043_v13  ;;  %v1075_v27 = vadd.f32 %v1073_v19, %v1068_v14  ;;  %v941_v28 = vadd.f32 %v940_v24, %v908_v16 }
 0x128   : > { %v1029_v33 = vadd.f32 %v1028_v21, %v1026_v25  ;;  %v1053_v34 = vadd.f32 %v1052_v22, %v1050_v26  ;;  %v1078_v35 = vadd.f32 %v1077_v23, %v1075_v27  ;;  %v978_v36 = vadd.f32 %v977_v10, %v941_v28 }
 0x12a   : > { %1031 = vst [vmem:[%s307_s25] sm:$0xff] %v1029_v33  ;;  %v1007_v39 = vadd.f32 %v1006_v32, %v978_v36 }
 0x12b   : > { %1266 = vst [vmem:[%s307_s25 + $0x10] sm:$0xff] %v1053_v34 }
 0x12c   : > { %1268 = vst [vmem:[%s307_s25 + $0x20] sm:$0xff] %v1078_v35  ;;  %v1025_v43 = vmul.f32 %v1426_v0, %v1007_v39  ;;  %v1049_v44 = vmul.f32 %v1427_v1, %v1007_v39  ;;  %v1074_v45 = vmul.f32 %v1428_v2, %v1007_v39 }
 0x12e   : > { %v1027_v46 = vadd.f32 %v1025_v43, %v1020_v40  ;;  %v1051_v47 = vadd.f32 %v1049_v44, %v1044_v41  ;;  %v1076_v48 = vadd.f32 %v1074_v45, %v1069_v42 }
 0x130   : > { %v1030_v49 = vadd.f32 %v1028_v21, %v1027_v46  ;;  %v1054_v50 = vadd.f32 %v1052_v22, %v1051_v47  ;;  %v1079_v51 = vadd.f32 %v1077_v23, %v1076_v48 }
 0x132   : > { %1032 = vst [vmem:[%s307_s25 + $0x8] sm:$0xff] %v1030_v49 }
 0x133   : > { %1267 = vst [vmem:[%s307_s25 + $0x18] sm:$0xff] %v1054_v50 }
 0x134   : > { %1269 = vst [vmem:[%s307_s25 + $0x28] sm:$0xff] %v1079_v51 }
 0x135   : > { %s1270_s27 = sshll.u32 %s1566_s18, 1  ;;  %s1285_s7 = smul.u32 12, %s1570_s19 }
 0x136   : > { %s1108_s8 = sshll.u32 %s307_s25, 4  ;;  %s1597_s23 = smov 256   ;;  %s1109_s8 = int_to_ptr.vmem [resolvable:$true] %s1108_s8 }
 0x137   : > { %s1095_s12 = sadd.s32 %s1285_s7, %s1270_s27  ;;  %1307 = sst [smem:[#allocation14]] (%p1700_p9), %s1597_s23 }
 0x138   : > { %s1271_s13 = sshll.u32 %s1095_s12, 3  ;;  %s2049_s26 = sld [smem:[#allocation27_spill]] }
 0x139   : > { %s1598_s4 = smov 512   ;;  %s1599_s18 = smov 2  }
 0x13a   : > { %1308 = sst [smem:[#allocation14 + $0x1]] (%p1700_p9), %s1598_s4  ;;  %s1600_s19 = smov 128  }
 0x13b   : > { %1309 = sst [smem:[#allocation14 + $0x2]] (%p1700_p9), %s1599_s18  ;;  %s1601_s0 = smov 8  }
 0x13c   : > { %1310 = sst [smem:[#allocation14 + $0x3]] (%p1700_p9), %s1600_s19  ;;  %s1602_s2 = smov [#allocation13]  }
 0x13d   : > { %1311 = sst [smem:[#allocation14 + $0x4]] (%p1700_p9), %s1600_s19  ;;  %s1603_s29 = smov 0  }
 0x13e   : > { %s1097_s10 = scalar_lea.hbm %s2049_s26, %s1271_s13  ;;  %1312 = sst [smem:[#allocation14 + $0x5]] (%p1700_p9), %s1601_s0 }
 0x13f   : > { %s1110_s28 = sshll.u32 %s1097_s10, 4  ;;  %s1111_s28 = int_to_ptr.hbm [resolvable:$true] %s1110_s28 }
 0x140   : > { %1313 = dma.general (%p1700_p9), %s1109_s8, 768, %s1111_s28, %s1084_s9, %s1602_s2, [#allocation14], %s1603_s29, 0  }
 0x141 PF: > { %s2050_s15 = sld [smem:[#allocation20_spill]]  ;;  %p1335_p3 = scmp.ge.s32.totalorder %s1582_s22, 2 }
 0x143   : > { %p1326_p6 = pnand %p1335_p3, %p1707_p13 }
 0x145   : > { %p1327_p7 = pneg %p1326_p6 }
 0x147   : > { %s1138_s5 = sand.u32 1, %s2050_s15  }
 0x148   : > { %s1139_s11 = scalar_lea.sflag [#allocation4], %s1138_s5 }
 0x149   : > { %1549 = dma.done.wait (%p1327_p7), %s1139_s11, 768  }
 0x14a   : > { %1551 = vsyncadd (%p1327_p7), %s1139_s11, 4294966528  ;;  %s22_s22 = sadd.s32 1, %s1582_s22   ;;  %s2052_s25 = sld [smem:[#allocation24_spill]] }
 0x14b   : > { %p19_p8 = scmp.ge.s32.totalorder %s22_s22, 6   ;;  %s2053_s6 = sld [smem:[#allocation21_spill]] }
 0x14c   : > { %s2054_s9 = sld [smem:[#allocation22_spill]]  ;;  %s2055_s15 = smov %s1558_s16 }
 0x14d   : > { %s2056_s16 = smov %s1562_s17  ;;  %s2058_s18 = smov %s1574_s20 }
 0x14e   : > { %s2059_s19 = smov %s1578_s21  ;;  %21 = sbr.rel (!%p19_p8) target bundleno = 13 (0xd), region = 116 }
 0x150   : > { %s2057_s17 = smov %s2052_s25 }
 0x151   : > { %s2060_s20 = smov %s2053_s6 }
 0x152   : > { %s2061_s21 = smov %s2054_s9 }
 0x153   :  { %1145 = vsyncpa [#allocation3], 1 }
 0x154   :  { %1147 = vsyncpa [#allocation3 + $0x1], 1 }
 0x155   :  { %1148 = vsyncpa [#allocation8], 1 }
 0x156   :  { %1149 = vsyncpa [#allocation4], 1 }
 0x157   :  { %1151 = vsyncpa [#allocation4 + $0x1], 1 }
 0x158   :  { %1152 = vsyncpa [#allocation5], 1 }
 0x159   :  { %1154 = vsyncpa [#allocation5 + $0x1], 1 }

</bundles_post_ra>
